<compile_context>
chip_gen: v5e
topology: v5e:2x2
jax: 0.10.0
libtpu: 0.0.40
codegen_flags: <defaults>
</compile_context>

<pallas_src>
import functools

import numpy as np
import jax
import jax.numpy as jnp
from jax.experimental import pallas as pl
from jax.experimental.pallas import tpu as pltpu


def _wsqe_kernel(tgt_ref, ap_ref, cb_ref, out_ref, w_ref, *, M, A, FK):
    """One row tile of the weighted-sum quantized embedding (transposed layout).

    tgt_ref: (A*M, TM) int32 -- absolute codebook row (f*max_K + code) for
                                (action j, segment i) at row j*M+i, per out row.
    ap_ref : (A,   TM) w_dt  -- arch_prob[f, j] replicated per (b, f) out row.
    cb_ref : (D, M*FK) c_dt  -- block-diagonal transposed codebook (resident).
    out_ref: (D,   TM) f32   -- transposed output tile (rows on the lane axis).
    w_ref  : (M*FK,TM) w_dt  -- VMEM scratch: stacked weighted selection matrix.
    """
    TM = out_ref.shape[1]
    w_dt = w_ref.dtype
    row = jax.lax.broadcasted_iota(jnp.int32, (FK, TM), 0)
    tgt = tgt_ref[...]
    zero = jnp.zeros((), w_dt)

    # Hoist the (1, TM) -> (FK, TM) probability broadcasts out of the segment
    # loop when the A extra live (FK, TM) values fit comfortably in the 64-vreg
    # file; otherwise re-broadcast per (segment, action) to avoid spills.
    hoist = A * FK * TM * jnp.dtype(w_dt).itemsize <= 24 * 4096

    def pbcast(j):
        return jnp.broadcast_to(ap_ref[j:j + 1, :].astype(w_dt), (FK, TM))

    p_all = [pbcast(j) for j in range(A)] if hoist else None

    for i in range(M):
        w = None
        for j in range(A):
            p = p_all[j] if hoist else pbcast(j)
            t = tgt[j * M + i:j * M + i + 1, :]            # (1, TM)
            if w is None:
                # First action initialises the block: no zero fill, no add.
                w = jnp.where(row == t, p, zero)
            else:
                # Duplicate indices across actions accumulate their
                # probabilities (matches the PyTorch += semantics).
                w = jnp.where(row == t, w + p, w)
        # FK is a multiple of 8 (16 for bf16 w) so these block writes stay
        # (8,128)-tile aligned -> plain vst, no masked copies.
        w_ref[i * FK:(i + 1) * FK, :] = w

    # Single high-occupancy MXU matmul: (D, M*FK) @ (M*FK, TM) -> (D, TM); the
    # BF row tile sits on the lane axis so the store is a lane-dense vst.
    out_ref[...] = jnp.dot(cb_ref[...], w_ref[...],
                           preferred_element_type=jnp.float32
                           ).astype(out_ref.dtype)


def _vmem_capacity_bytes():
    try:
        return int(pltpu.get_tpu_info().vmem_capacity_bytes)
    except Exception:                      # conservative default (v7x-sized)
        return 64 * 1024 * 1024


def _pick_row_tile(bf_rows, fk, vmem_cap, tm_req):
    """Pick the BF row tile (lane axis) and the padded row count."""
    bf128 = pl.cdiv(bf_rows, 128) * 128
    if tm_req is not None:
        tm = max(128, (int(tm_req) // 128) * 128)
    else:
        # Large-VMEM chips (v5e/v6e: 128 MiB) can take bigger tiles than v7x.
        tm = 1024 if vmem_cap >= (100 << 20) else 512
        # Keep ~3 live (FK, tm) temporaries (iota, p, w) within ~48 vregs.
        while tm > 128 and 3 * fk * tm * 4 > 48 * 4096:
            tm //= 2
    tm = min(tm, bf128)
    # Give the grid >= 2 steps whenever the row count allows it so that
    # dimension_semantics=("parallel",) can shard rows across both v7x cores.
    if bf128 > 128 and bf128 <= tm:
        tm = pl.cdiv(bf128 // 2, 128) * 128
    bfp = pl.cdiv(bf128, tm) * tm
    return tm, bfp


def weighted_sum_quat_embedding(x, arch_prob, codebooks, cb_index_weights,
                                field_dims, max_K, M, *, tm=None,
                                compute_dtype=jnp.float32):
    """Pallas implementation of WeightedSumQuatEmbedding.forward.

    compute_dtype=jnp.bfloat16 is recommended on v6e/v7x (bf16 VALU + MXU,
    halved codebook VMEM); keep the default float32 on v5e or when bit-level
    agreement with the float32 reference is required.
    """
    B, F = x.shape
    FK, D = codebooks.shape
    A = len(cb_index_weights)
    assert len(field_dims) == F, "x fields must match field_dims"
    assert FK == F * max_K, "codebooks must have len(field_dims)*max_K rows"
    assert D % M == 0, "embed_dim must be divisible by M"
    plen = D // M
    del plen  # not sliced in-kernel anymore (block-diagonal codebook)
    BF = B * F

    vmem_cap = _vmem_capacity_bytes()
    tm, BFp = _pick_row_tile(BF, FK, vmem_cap, tm)
    vmem_limit = (96 << 20) if vmem_cap >= (100 << 20) else (48 << 20)

    compute_dtype = jnp.dtype(compute_dtype)
    w_dtype = compute_dtype
    if compute_dtype == jnp.dtype(jnp.bfloat16) and FK % 16 != 0:
        # Keep the scratch segment-block writes sublane-aligned.
        w_dtype = jnp.dtype(jnp.float32)

    offsets_a = jnp.asarray(
        np.array((0, *np.cumsum(field_dims)[:-1]), dtype=np.int32))
    index_offsets = max_K * jnp.arange(F, dtype=jnp.int32)

    # --- glue: tiny integer index preparation (stays in XLA) ---
    # NOTE: codebook indices are assumed in-range (0 <= idx < max_K), matching
    # the PyTorch module; out-of-range rows would silently contribute zero here.
    gx = x.astype(jnp.int32) + offsets_a[None, :]                          # (B, F)
    idx = jnp.stack([cb_index_weights[j][gx] for j in range(A)], axis=0)   # (A,B,F,M)
    tgt = idx.astype(jnp.int32) + index_offsets[None, None, :, None]       # + f*max_K
    tgt_T = jnp.transpose(tgt, (0, 3, 1, 2)).reshape(A * M, BF)            # (A*M, BF)

    ap_T = jnp.transpose(arch_prob.astype(w_dtype), (1, 0))                # (A, F)
    ap_T = jnp.broadcast_to(ap_T[:, None, :], (A, B, F)).reshape(A, BF)    # (A, BF)

    if BFp != BF:
        # Padded rows select codebook row 0 with weight 0 -> zero output rows.
        tgt_T = jnp.pad(tgt_T, ((0, 0), (0, BFp - BF)))
        ap_T = jnp.pad(ap_T, ((0, 0), (0, BFp - BF)))

    # Block-diagonal transposed codebook (D, M*FK): block i holds
    # codebooks.T[i*plen:(i+1)*plen, :] at columns i*FK..(i+1)*FK, zeros
    # elsewhere.  Built once per call; in a real model precompute it once per
    # codebook update.  VMEM residency is M x the codebook size (fine here).
    plen_ = D // M
    cbT = codebooks.astype(compute_dtype).T                                # (D, FK)
    zeros_blk = jnp.zeros((D, FK), compute_dtype)
    cb_bd = jnp.concatenate(
        [zeros_blk.at[i * plen_:(i + 1) * plen_, :]
                  .set(cbT[i * plen_:(i + 1) * plen_, :]) for i in range(M)],
        axis=1)                                                            # (D, M*FK)

    kernel = functools.partial(_wsqe_kernel, M=M, A=A, FK=FK)
    cost = pl.CostEstimate(
        flops=2 * BFp * (M * FK) * D,
        transcendentals=0,
        bytes_accessed=int(tgt_T.size * 4
                           + ap_T.size * ap_T.dtype.itemsize
                           + cb_bd.size * cb_bd.dtype.itemsize
                           + D * BFp * 4),
    )

    def _call(single_buffer_cb):
        if single_buffer_cb:
            cb_spec = pl.BlockSpec((D, M * FK), lambda i: (0, 0),
                                   pipeline_mode=pl.Buffered(1))
        else:
            cb_spec = pl.BlockSpec((D, M * FK), lambda i: (0, 0))
        return pl.pallas_call(
            kernel,
            out_shape=jax.ShapeDtypeStruct((D, BFp), jnp.float32),
            grid=(BFp // tm,),
            in_specs=[
                pl.BlockSpec((A * M, tm), lambda i: (0, i)),  # row tile: indices
                pl.BlockSpec((A, tm), lambda i: (0, i)),      # row tile: arch_prob
                cb_spec,                                      # codebook, resident
            ],
            out_specs=pl.BlockSpec((D, tm), lambda i: (0, i)),
            scratch_shapes=[pltpu.VMEM((M * FK, tm), w_dtype)],
            compiler_params=pltpu.CompilerParams(
                dimension_semantics=("parallel",),
                vmem_limit_bytes=vmem_limit,
            ),
            cost_estimate=cost,
        )(tgt_T, ap_T, cb_bd)

    try:
        # Single-buffer the resident codebook (constant index_map needs no
        # double buffering; halves its VMEM footprint at production FK).
        out_T = jax.block_until_ready(_call(True))
    except Exception:
        # Fallback for Pallas versions that reject pipeline_mode=Buffered(1).
        out_T = _call(False)

    emb_T = out_T[:, :BF]                                  # (D, BF)
    return jnp.transpose(emb_T, (1, 0)).reshape(B, F, D)


def _ref_forward(x, arch_prob, codebooks, cb_index_weights, field_dims, max_K, M):
    """Pure NumPy reference matching the PyTorch forward exactly."""
    x = np.asarray(x)
    arch_prob = np.asarray(arch_prob, dtype=np.float32)
    codebooks = np.asarray(codebooks, dtype=np.float32)
    cbw = [np.asarray(w) for w in cb_index_weights]
    B, F = x.shape
    D = codebooks.shape[1]
    A = len(cbw)
    plen = D // M
    offsets_a = np.array((0, *np.cumsum(field_dims)[:-1]), dtype=np.int64)
    index_offsets = max_K * np.arange(F, dtype=np.int64)

    gx = x + offsets_a[None, :]
    emb = np.zeros((B, F, D), np.float32)
    for j in range(A):
        index = cbw[j][gx]                              # (B, F, M)
        arch_prob_j = arch_prob[:, j][:, None]          # (F, 1) -> broadcast
        for i in range(M):
            index_i = index[:, :, i] + index_offsets[None, :]
            emb[:, :, i * plen:(i + 1) * plen] += (
                arch_prob_j * codebooks[index_i][:, :, i * plen:(i + 1) * plen])
    return emb


if __name__ == "__main__":
    def run_case(B, field_dims, embed_dim, M, max_K, A, compute_dtype,
                 rtol, atol, seed=0):
        F = len(field_dims)
        key = jax.random.PRNGKey(seed)
        kx, kcb, kidx, kap = jax.random.split(key, 4)

        # Deterministic synthetic parameters (no checkpoint loads).
        codebooks = 0.02 * jax.random.normal(kcb, (F * max_K, embed_dim),
                                             dtype=jnp.float32)
        cb_index_weights = [
            jax.random.randint(jax.random.fold_in(kidx, j),
                               (int(sum(field_dims)), M), 0, max_K,
                               dtype=jnp.int32)
            for j in range(A)
        ]

        # Inputs: per-field indices and per-field architecture probabilities.
        cols = [
            jax.random.randint(jax.random.fold_in(kx, f), (B, 1), 0, fd,
                               dtype=jnp.int32)
            for f, fd in enumerate(field_dims)
        ]
        x = jnp.concatenate(cols, axis=1)                                # (B, F)
        arch_prob = jax.nn.softmax(
            jax.random.normal(kap, (F, A), dtype=jnp.float32), axis=-1)  # (F, A)

        emb = weighted_sum_quat_embedding(
            x, arch_prob, codebooks, cb_index_weights, field_dims, max_K, M,
            compute_dtype=compute_dtype)
        emb = jax.block_until_ready(emb)

        ref = _ref_forward(x, arch_prob, codebooks, cb_index_weights,
                           field_dims, max_K, M)
        np.testing.assert_allclose(np.asarray(emb, dtype=np.float32), ref,
                                   rtol=rtol, atol=atol)

    # 1) Exact f32 path at the module's small shapes (B=2, F=4, D=32, M=4, K=8).
    run_case(B=2, field_dims=[5, 7, 3, 9], embed_dim=32, M=4, max_K=8, A=3,
             compute_dtype=jnp.float32, rtol=1e-5, atol=1e-5)

    # 2) bf16-operand path (v6e/v7x recommendation) with a larger batch so the
    #    grid has >= 2 row tiles (exercises padding + the 'parallel' row axis).
    run_case(B=80, field_dims=[5, 7, 3, 9], embed_dim=32, M=4, max_K=8, A=3,
             compute_dtype=jnp.bfloat16, rtol=5e-2, atol=5e-3)

    print("KERNEL_OK")
</pallas_src>

<mosaic_0001>
module attributes {stable_mosaic.version = 11 : i64} {
  func.func @_wsqe_kernel(%arg0: i32, %arg1: memref<12x128xi32, #tpu.memory_space<vmem>>, %arg2: memref<3x128xf32, #tpu.memory_space<vmem>>, %arg3: memref<32x128xf32, #tpu.memory_space<vmem>>, %arg4: memref<32x128xf32, #tpu.memory_space<vmem>>, %arg5: memref<128x128xf32, #tpu.memory_space<vmem>>) attributes {dimension_semantics = [#tpu.dimension_semantics<parallel>], iteration_bounds = array<i64: 1>, scalar_prefetch = 0 : i64, scratch_operands = 1 : i64, tpu.core_type = #tpu.core_type<tc>, window_params = [{transform_indices = @transform_0, window_bounds = array<i64: 12, 128>}, {transform_indices = @transform_1, window_bounds = array<i64: 3, 128>}, {pipeline_mode = #tpu.pipeline_mode<synchronous>, transform_indices = @transform_2, window_bounds = array<i64: 32, 128>}, {transform_indices = @transform_3, window_bounds = array<i64: 32, 128>}]} {
    %0 = tpu.iota {dimensions = array<i32: 0>} : vector<32x128xi32>
    %c0 = arith.constant 0 : index
    %c0_0 = arith.constant 0 : index
    %1 = vector.load %arg1[%c0, %c0_0] : memref<12x128xi32, #tpu.memory_space<vmem>>, vector<12x128xi32>
    %c0_1 = arith.constant 0 : index
    %c0_2 = arith.constant 0 : index
    %2 = vector.load %arg2[%c0_1, %c0_2] : memref<3x128xf32, #tpu.memory_space<vmem>>, vector<1x128xf32>
    %3 = vector.shape_cast %2 : vector<1x128xf32> to vector<1x128xf32>
    %4 = vector.broadcast %3 : vector<1x128xf32> to vector<32x128xf32>
    %c1 = arith.constant 1 : index
    %c0_3 = arith.constant 0 : index
    %5 = vector.load %arg2[%c1, %c0_3] : memref<3x128xf32, #tpu.memory_space<vmem>>, vector<1x128xf32>
    %6 = vector.shape_cast %5 : vector<1x128xf32> to vector<1x128xf32>
    %7 = vector.broadcast %6 : vector<1x128xf32> to vector<32x128xf32>
    %c2 = arith.constant 2 : index
    %c0_4 = arith.constant 0 : index
    %8 = vector.load %arg2[%c2, %c0_4] : memref<3x128xf32, #tpu.memory_space<vmem>>, vector<1x128xf32>
    %9 = vector.shape_cast %8 : vector<1x128xf32> to vector<1x128xf32>
    %10 = vector.broadcast %9 : vector<1x128xf32> to vector<32x128xf32>
    %11 = vector.extract_strided_slice %1 {offsets = [0, 0], sizes = [1, 128], strides = [1, 1]} : vector<12x128xi32> to vector<1x128xi32>
    %12 = vector.broadcast %11 : vector<1x128xi32> to vector<32x128xi32>
    %13 = arith.cmpi eq, %0, %12 : vector<32x128xi32>
    %cst = arith.constant 0.000000e+00 : f32
    %14 = vector.broadcast %cst : f32 to vector<32x128xf32>
    %15 = arith.select %13, %4, %14 : vector<32x128xi1>, vector<32x128xf32>
    %16 = vector.extract_strided_slice %1 {offsets = [4, 0], sizes = [1, 128], strides = [1, 1]} : vector<12x128xi32> to vector<1x128xi32>
    %17 = vector.broadcast %16 : vector<1x128xi32> to vector<32x128xi32>
    %18 = arith.cmpi eq, %0, %17 : vector<32x128xi32>
    %19 = arith.addf %15, %7 : vector<32x128xf32>
    %20 = arith.select %18, %19, %15 : vector<32x128xi1>, vector<32x128xf32>
    %21 = vector.extract_strided_slice %1 {offsets = [8, 0], sizes = [1, 128], strides = [1, 1]} : vector<12x128xi32> to vector<1x128xi32>
    %22 = vector.broadcast %21 : vector<1x128xi32> to vector<32x128xi32>
    %23 = arith.cmpi eq, %0, %22 : vector<32x128xi32>
    %24 = arith.addf %20, %10 : vector<32x128xf32>
    %25 = arith.select %23, %24, %20 : vector<32x128xi1>, vector<32x128xf32>
    %c0_5 = arith.constant 0 : index
    %c0_6 = arith.constant 0 : index
    %26 = vector.load %arg5[%c0_5, %c0_6] : memref<128x128xf32, #tpu.memory_space<vmem>>, vector<32x128xf32>
    tpu.vector_store %arg5[%c0_5, %c0_6], %25 {strides = array<i32>} : memref<128x128xf32, #tpu.memory_space<vmem>>, vector<32x128xf32>,
    %27 = vector.extract_strided_slice %1 {offsets = [1, 0], sizes = [1, 128], strides = [1, 1]} : vector<12x128xi32> to vector<1x128xi32>
    %28 = vector.broadcast %27 : vector<1x128xi32> to vector<32x128xi32>
    %29 = arith.cmpi eq, %0, %28 : vector<32x128xi32>
    %cst_7 = arith.constant 0.000000e+00 : f32
    %30 = vector.broadcast %cst_7 : f32 to vector<32x128xf32>
    %31 = arith.select %29, %4, %30 : vector<32x128xi1>, vector<32x128xf32>
    %32 = vector.extract_strided_slice %1 {offsets = [5, 0], sizes = [1, 128], strides = [1, 1]} : vector<12x128xi32> to vector<1x128xi32>
    %33 = vector.broadcast %32 : vector<1x128xi32> to vector<32x128xi32>
    %34 = arith.cmpi eq, %0, %33 : vector<32x128xi32>
    %35 = arith.addf %31, %7 : vector<32x128xf32>
    %36 = arith.select %34, %35, %31 : vector<32x128xi1>, vector<32x128xf32>
    %37 = vector.extract_strided_slice %1 {offsets = [9, 0], sizes = [1, 128], strides = [1, 1]} : vector<12x128xi32> to vector<1x128xi32>
    %38 = vector.broadcast %37 : vector<1x128xi32> to vector<32x128xi32>
    %39 = arith.cmpi eq, %0, %38 : vector<32x128xi32>
    %40 = arith.addf %36, %10 : vector<32x128xf32>
    %41 = arith.select %39, %40, %36 : vector<32x128xi1>, vector<32x128xf32>
    %c32 = arith.constant 32 : index
    %c0_8 = arith.constant 0 : index
    %42 = vector.load %arg5[%c32, %c0_8] : memref<128x128xf32, #tpu.memory_space<vmem>>, vector<32x128xf32>
    tpu.vector_store %arg5[%c32, %c0_8], %41 {strides = array<i32>} : memref<128x128xf32, #tpu.memory_space<vmem>>, vector<32x128xf32>,
    %43 = vector.extract_strided_slice %1 {offsets = [2, 0], sizes = [1, 128], strides = [1, 1]} : vector<12x128xi32> to vector<1x128xi32>
    %44 = vector.broadcast %43 : vector<1x128xi32> to vector<32x128xi32>
    %45 = arith.cmpi eq, %0, %44 : vector<32x128xi32>
    %cst_9 = arith.constant 0.000000e+00 : f32
    %46 = vector.broadcast %cst_9 : f32 to vector<32x128xf32>
    %47 = arith.select %45, %4, %46 : vector<32x128xi1>, vector<32x128xf32>
    %48 = vector.extract_strided_slice %1 {offsets = [6, 0], sizes = [1, 128], strides = [1, 1]} : vector<12x128xi32> to vector<1x128xi32>
    %49 = vector.broadcast %48 : vector<1x128xi32> to vector<32x128xi32>
    %50 = arith.cmpi eq, %0, %49 : vector<32x128xi32>
    %51 = arith.addf %47, %7 : vector<32x128xf32>
    %52 = arith.select %50, %51, %47 : vector<32x128xi1>, vector<32x128xf32>
    %53 = vector.extract_strided_slice %1 {offsets = [10, 0], sizes = [1, 128], strides = [1, 1]} : vector<12x128xi32> to vector<1x128xi32>
    %54 = vector.broadcast %53 : vector<1x128xi32> to vector<32x128xi32>
    %55 = arith.cmpi eq, %0, %54 : vector<32x128xi32>
    %56 = arith.addf %52, %10 : vector<32x128xf32>
    %57 = arith.select %55, %56, %52 : vector<32x128xi1>, vector<32x128xf32>
    %c64 = arith.constant 64 : index
    %c0_10 = arith.constant 0 : index
    %58 = vector.load %arg5[%c64, %c0_10] : memref<128x128xf32, #tpu.memory_space<vmem>>, vector<32x128xf32>
    tpu.vector_store %arg5[%c64, %c0_10], %57 {strides = array<i32>} : memref<128x128xf32, #tpu.memory_space<vmem>>, vector<32x128xf32>,
    %59 = vector.extract_strided_slice %1 {offsets = [3, 0], sizes = [1, 128], strides = [1, 1]} : vector<12x128xi32> to vector<1x128xi32>
    %60 = vector.broadcast %59 : vector<1x128xi32> to vector<32x128xi32>
    %61 = arith.cmpi eq, %0, %60 : vector<32x128xi32>
    %cst_11 = arith.constant 0.000000e+00 : f32
    %62 = vector.broadcast %cst_11 : f32 to vector<32x128xf32>
    %63 = arith.select %61, %4, %62 : vector<32x128xi1>, vector<32x128xf32>
    %64 = vector.extract_strided_slice %1 {offsets = [7, 0], sizes = [1, 128], strides = [1, 1]} : vector<12x128xi32> to vector<1x128xi32>
    %65 = vector.broadcast %64 : vector<1x128xi32> to vector<32x128xi32>
    %66 = arith.cmpi eq, %0, %65 : vector<32x128xi32>
    %67 = arith.addf %63, %7 : vector<32x128xf32>
    %68 = arith.select %66, %67, %63 : vector<32x128xi1>, vector<32x128xf32>
    %69 = vector.extract_strided_slice %1 {offsets = [11, 0], sizes = [1, 128], strides = [1, 1]} : vector<12x128xi32> to vector<1x128xi32>
    %70 = vector.broadcast %69 : vector<1x128xi32> to vector<32x128xi32>
    %71 = arith.cmpi eq, %0, %70 : vector<32x128xi32>
    %72 = arith.addf %68, %10 : vector<32x128xf32>
    %73 = arith.select %71, %72, %68 : vector<32x128xi1>, vector<32x128xf32>
    %c96 = arith.constant 96 : index
    %c0_12 = arith.constant 0 : index
    %74 = vector.load %arg5[%c96, %c0_12] : memref<128x128xf32, #tpu.memory_space<vmem>>, vector<32x128xf32>
    tpu.vector_store %arg5[%c96, %c0_12], %73 {strides = array<i32>} : memref<128x128xf32, #tpu.memory_space<vmem>>, vector<32x128xf32>,
    %c0_13 = arith.constant 0 : index
    %c0_14 = arith.constant 0 : index
    %75 = vector.load %arg3[%c0_13, %c0_14] : memref<32x128xf32, #tpu.memory_space<vmem>>, vector<32x128xf32>
    %c0_15 = arith.constant 0 : index
    %c0_16 = arith.constant 0 : index
    %76 = vector.load %arg5[%c0_15, %c0_16] : memref<128x128xf32, #tpu.memory_space<vmem>>, vector<128x128xf32>
    %cst_17 = arith.constant dense<0.000000e+00> : vector<32x128xf32>
    %77 = tpu.matmul %75, %76, %cst_17 {dimension_numbers = #tpu.dot_dimension_numbers<[1], [0], [0], [1], [0, 0, 1, 1], [], []>} : vector<32x128xf32>, vector<128x128xf32>, vector<32x128xf32> -> vector<32x128xf32>
    %c0_18 = arith.constant 0 : index
    %c0_19 = arith.constant 0 : index
    %78 = vector.load %arg4[%c0_18, %c0_19] : memref<32x128xf32, #tpu.memory_space<vmem>>, vector<32x128xf32>
    tpu.vector_store %arg4[%c0_18, %c0_19], %77 {strides = array<i32>} : memref<32x128xf32, #tpu.memory_space<vmem>>, vector<32x128xf32>,
    return
  }
  func.func @transform_0(%arg0: i32) -> (i32, i32) {
    %c0_i32 = arith.constant 0 : i32
    %c0_i32_0 = arith.constant 0 : i32
    return %c0_i32, %arg0 : i32, i32
  }
  func.func @transform_1(%arg0: i32) -> (i32, i32) {
    %c0_i32 = arith.constant 0 : i32
    %c0_i32_0 = arith.constant 0 : i32
    return %c0_i32, %arg0 : i32, i32
  }
  func.func @transform_2(%arg0: i32) -> (i32, i32) {
    %c0_i32 = arith.constant 0 : i32
    %c0_i32_0 = arith.constant 0 : i32
    %c0_i32_1 = arith.constant 0 : i32
    return %c0_i32, %c0_i32_0 : i32, i32
  }
  func.func @transform_3(%arg0: i32) -> (i32, i32) {
    %c0_i32 = arith.constant 0 : i32
    %c0_i32_0 = arith.constant 0 : i32
    return %c0_i32, %arg0 : i32, i32
  }
}

module attributes {stable_mosaic.version = 11 : i64} {
  func.func @_wsqe_kernel(%arg0: i32, %arg1: memref<12x128xi32, #tpu.memory_space<vmem>>, %arg2: memref<3x128xf32, #tpu.memory_space<vmem>>, %arg3: memref<32x128xf32, #tpu.memory_space<vmem>>, %arg4: memref<32x128xf32, #tpu.memory_space<vmem>>, %arg5: memref<128x128xf32, #tpu.memory_space<vmem>>) attributes {dimension_semantics = [#tpu.dimension_semantics<parallel>], iteration_bounds = array<i64: 1>, scalar_prefetch = 0 : i64, scratch_operands = 1 : i64, tpu.core_type = #tpu.core_type<tc>, window_params = [{transform_indices = @transform_0, window_bounds = array<i64: 12, 128>}, {transform_indices = @transform_1, window_bounds = array<i64: 3, 128>}, {pipeline_mode = #tpu.pipeline_mode<synchronous>, transform_indices = @transform_2, window_bounds = array<i64: 32, 128>}, {transform_indices = @transform_3, window_bounds = array<i64: 32, 128>}]} {
    %0 = tpu.iota {dimensions = array<i32: 0>} : vector<32x128xi32>
    %c0 = arith.constant 0 : index
    %c0_0 = arith.constant 0 : index
    %1 = vector.load %arg1[%c0, %c0_0] : memref<12x128xi32, #tpu.memory_space<vmem>>, vector<12x128xi32>
    %c0_1 = arith.constant 0 : index
    %c0_2 = arith.constant 0 : index
    %2 = vector.load %arg2[%c0_1, %c0_2] : memref<3x128xf32, #tpu.memory_space<vmem>>, vector<1x128xf32>
    %3 = vector.shape_cast %2 : vector<1x128xf32> to vector<1x128xf32>
    %4 = vector.broadcast %3 : vector<1x128xf32> to vector<32x128xf32>
    %c1 = arith.constant 1 : index
    %c0_3 = arith.constant 0 : index
    %5 = vector.load %arg2[%c1, %c0_3] : memref<3x128xf32, #tpu.memory_space<vmem>>, vector<1x128xf32>
    %6 = vector.shape_cast %5 : vector<1x128xf32> to vector<1x128xf32>
    %7 = vector.broadcast %6 : vector<1x128xf32> to vector<32x128xf32>
    %c2 = arith.constant 2 : index
    %c0_4 = arith.constant 0 : index
    %8 = vector.load %arg2[%c2, %c0_4] : memref<3x128xf32, #tpu.memory_space<vmem>>, vector<1x128xf32>
    %9 = vector.shape_cast %8 : vector<1x128xf32> to vector<1x128xf32>
    %10 = vector.broadcast %9 : vector<1x128xf32> to vector<32x128xf32>
    %11 = vector.extract_strided_slice %1 {offsets = [0, 0], sizes = [1, 128], strides = [1, 1]} : vector<12x128xi32> to vector<1x128xi32>
    %12 = vector.broadcast %11 : vector<1x128xi32> to vector<32x128xi32>
    %13 = arith.cmpi eq, %0, %12 : vector<32x128xi32>
    %cst = arith.constant 0.000000e+00 : f32
    %14 = vector.broadcast %cst : f32 to vector<32x128xf32>
    %15 = arith.select %13, %4, %14 : vector<32x128xi1>, vector<32x128xf32>
    %16 = vector.extract_strided_slice %1 {offsets = [4, 0], sizes = [1, 128], strides = [1, 1]} : vector<12x128xi32> to vector<1x128xi32>
    %17 = vector.broadcast %16 : vector<1x128xi32> to vector<32x128xi32>
    %18 = arith.cmpi eq, %0, %17 : vector<32x128xi32>
    %19 = arith.addf %15, %7 : vector<32x128xf32>
    %20 = arith.select %18, %19, %15 : vector<32x128xi1>, vector<32x128xf32>
    %21 = vector.extract_strided_slice %1 {offsets = [8, 0], sizes = [1, 128], strides = [1, 1]} : vector<12x128xi32> to vector<1x128xi32>
    %22 = vector.broadcast %21 : vector<1x128xi32> to vector<32x128xi32>
    %23 = arith.cmpi eq, %0, %22 : vector<32x128xi32>
    %24 = arith.addf %20, %10 : vector<32x128xf32>
    %25 = arith.select %23, %24, %20 : vector<32x128xi1>, vector<32x128xf32>
    %c0_5 = arith.constant 0 : index
    %c0_6 = arith.constant 0 : index
    %26 = vector.load %arg5[%c0_5, %c0_6] : memref<128x128xf32, #tpu.memory_space<vmem>>, vector<32x128xf32>
    tpu.vector_store %arg5[%c0_5, %c0_6], %25 {strides = array<i32>} : memref<128x128xf32, #tpu.memory_space<vmem>>, vector<32x128xf32>,
    %27 = vector.extract_strided_slice %1 {offsets = [1, 0], sizes = [1, 128], strides = [1, 1]} : vector<12x128xi32> to vector<1x128xi32>
    %28 = vector.broadcast %27 : vector<1x128xi32> to vector<32x128xi32>
    %29 = arith.cmpi eq, %0, %28 : vector<32x128xi32>
    %cst_7 = arith.constant 0.000000e+00 : f32
    %30 = vector.broadcast %cst_7 : f32 to vector<32x128xf32>
    %31 = arith.select %29, %4, %30 : vector<32x128xi1>, vector<32x128xf32>
    %32 = vector.extract_strided_slice %1 {offsets = [5, 0], sizes = [1, 128], strides = [1, 1]} : vector<12x128xi32> to vector<1x128xi32>
    %33 = vector.broadcast %32 : vector<1x128xi32> to vector<32x128xi32>
    %34 = arith.cmpi eq, %0, %33 : vector<32x128xi32>
    %35 = arith.addf %31, %7 : vector<32x128xf32>
    %36 = arith.select %34, %35, %31 : vector<32x128xi1>, vector<32x128xf32>
    %37 = vector.extract_strided_slice %1 {offsets = [9, 0], sizes = [1, 128], strides = [1, 1]} : vector<12x128xi32> to vector<1x128xi32>
    %38 = vector.broadcast %37 : vector<1x128xi32> to vector<32x128xi32>
    %39 = arith.cmpi eq, %0, %38 : vector<32x128xi32>
    %40 = arith.addf %36, %10 : vector<32x128xf32>
    %41 = arith.select %39, %40, %36 : vector<32x128xi1>, vector<32x128xf32>
    %c32 = arith.constant 32 : index
    %c0_8 = arith.constant 0 : index
    %42 = vector.load %arg5[%c32, %c0_8] : memref<128x128xf32, #tpu.memory_space<vmem>>, vector<32x128xf32>
    tpu.vector_store %arg5[%c32, %c0_8], %41 {strides = array<i32>} : memref<128x128xf32, #tpu.memory_space<vmem>>, vector<32x128xf32>,
    %43 = vector.extract_strided_slice %1 {offsets = [2, 0], sizes = [1, 128], strides = [1, 1]} : vector<12x128xi32> to vector<1x128xi32>
    %44 = vector.broadcast %43 : vector<1x128xi32> to vector<32x128xi32>
    %45 = arith.cmpi eq, %0, %44 : vector<32x128xi32>
    %cst_9 = arith.constant 0.000000e+00 : f32
    %46 = vector.broadcast %cst_9 : f32 to vector<32x128xf32>
    %47 = arith.select %45, %4, %46 : vector<32x128xi1>, vector<32x128xf32>
    %48 = vector.extract_strided_slice %1 {offsets = [6, 0], sizes = [1, 128], strides = [1, 1]} : vector<12x128xi32> to vector<1x128xi32>
    %49 = vector.broadcast %48 : vector<1x128xi32> to vector<32x128xi32>
    %50 = arith.cmpi eq, %0, %49 : vector<32x128xi32>
    %51 = arith.addf %47, %7 : vector<32x128xf32>
    %52 = arith.select %50, %51, %47 : vector<32x128xi1>, vector<32x128xf32>
    %53 = vector.extract_strided_slice %1 {offsets = [10, 0], sizes = [1, 128], strides = [1, 1]} : vector<12x128xi32> to vector<1x128xi32>
    %54 = vector.broadcast %53 : vector<1x128xi32> to vector<32x128xi32>
    %55 = arith.cmpi eq, %0, %54 : vector<32x128xi32>
    %56 = arith.addf %52, %10 : vector<32x128xf32>
    %57 = arith.select %55, %56, %52 : vector<32x128xi1>, vector<32x128xf32>
    %c64 = arith.constant 64 : index
    %c0_10 = arith.constant 0 : index
    %58 = vector.load %arg5[%c64, %c0_10] : memref<128x128xf32, #tpu.memory_space<vmem>>, vector<32x128xf32>
    tpu.vector_store %arg5[%c64, %c0_10], %57 {strides = array<i32>} : memref<128x128xf32, #tpu.memory_space<vmem>>, vector<32x128xf32>,
    %59 = vector.extract_strided_slice %1 {offsets = [3, 0], sizes = [1, 128], strides = [1, 1]} : vector<12x128xi32> to vector<1x128xi32>
    %60 = vector.broadcast %59 : vector<1x128xi32> to vector<32x128xi32>
    %61 = arith.cmpi eq, %0, %60 : vector<32x128xi32>
    %cst_11 = arith.constant 0.000000e+00 : f32
    %62 = vector.broadcast %cst_11 : f32 to vector<32x128xf32>
    %63 = arith.select %61, %4, %62 : vector<32x128xi1>, vector<32x128xf32>
    %64 = vector.extract_strided_slice %1 {offsets = [7, 0], sizes = [1, 128], strides = [1, 1]} : vector<12x128xi32> to vector<1x128xi32>
    %65 = vector.broadcast %64 : vector<1x128xi32> to vector<32x128xi32>
    %66 = arith.cmpi eq, %0, %65 : vector<32x128xi32>
    %67 = arith.addf %63, %7 : vector<32x128xf32>
    %68 = arith.select %66, %67, %63 : vector<32x128xi1>, vector<32x128xf32>
    %69 = vector.extract_strided_slice %1 {offsets = [11, 0], sizes = [1, 128], strides = [1, 1]} : vector<12x128xi32> to vector<1x128xi32>
    %70 = vector.broadcast %69 : vector<1x128xi32> to vector<32x128xi32>
    %71 = arith.cmpi eq, %0, %70 : vector<32x128xi32>
    %72 = arith.addf %68, %10 : vector<32x128xf32>
    %73 = arith.select %71, %72, %68 : vector<32x128xi1>, vector<32x128xf32>
    %c96 = arith.constant 96 : index
    %c0_12 = arith.constant 0 : index
    %74 = vector.load %arg5[%c96, %c0_12] : memref<128x128xf32, #tpu.memory_space<vmem>>, vector<32x128xf32>
    tpu.vector_store %arg5[%c96, %c0_12], %73 {strides = array<i32>} : memref<128x128xf32, #tpu.memory_space<vmem>>, vector<32x128xf32>,
    %c0_13 = arith.constant 0 : index
    %c0_14 = arith.constant 0 : index
    %75 = vector.load %arg3[%c0_13, %c0_14] : memref<32x128xf32, #tpu.memory_space<vmem>>, vector<32x128xf32>
    %c0_15 = arith.constant 0 : index
    %c0_16 = arith.constant 0 : index
    %76 = vector.load %arg5[%c0_15, %c0_16] : memref<128x128xf32, #tpu.memory_space<vmem>>, vector<128x128xf32>
    %cst_17 = arith.constant dense<0.000000e+00> : vector<32x128xf32>
    %77 = tpu.matmul %75, %76, %cst_17 {dimension_numbers = #tpu.dot_dimension_numbers<[1], [0], [0], [1], [0, 0, 1, 1], [], []>} : vector<32x128xf32>, vector<128x128xf32>, vector<32x128xf32> -> vector<32x128xf32>
    %c0_18 = arith.constant 0 : index
    %c0_19 = arith.constant 0 : index
    %78 = vector.load %arg4[%c0_18, %c0_19] : memref<32x128xf32, #tpu.memory_space<vmem>>, vector<32x128xf32>
    tpu.vector_store %arg4[%c0_18, %c0_19], %77 {strides = array<i32>} : memref<32x128xf32, #tpu.memory_space<vmem>>, vector<32x128xf32>,
    return
  }
  func.func @transform_0(%arg0: i32) -> (i32, i32) {
    %c0_i32 = arith.constant 0 : i32
    %c0_i32_0 = arith.constant 0 : i32
    return %c0_i32, %arg0 : i32, i32
  }
  func.func @transform_1(%arg0: i32) -> (i32, i32) {
    %c0_i32 = arith.constant 0 : i32
    %c0_i32_0 = arith.constant 0 : i32
    return %c0_i32, %arg0 : i32, i32
  }
  func.func @transform_2(%arg0: i32) -> (i32, i32) {
    %c0_i32 = arith.constant 0 : i32
    %c0_i32_0 = arith.constant 0 : i32
    %c0_i32_1 = arith.constant 0 : i32
    return %c0_i32, %c0_i32_0 : i32, i32
  }
  func.func @transform_3(%arg0: i32) -> (i32, i32) {
    %c0_i32 = arith.constant 0 : i32
    %c0_i32_0 = arith.constant 0 : i32
    return %c0_i32, %arg0 : i32, i32
  }
}

</mosaic_0001>

<bundles_post_ra>
// kernel: tpu_custom_call.1
= control target key start
LH: loop header
LB: loop body
LE: loop exit
PB: predicated region body
PF: predicated region fallthrough
CT: control target
= control target key end

     0   :  { %8 = vsyncpa [#allocation4], 0  ;;  %s760_s0 = inlined_call_operand.hbm [shape: s32[12,128], index: 0, kind: input, shape index: {}]   ;;  %s761_s1 = inlined_call_operand.hbm [shape: f32[3,128], index: 1, kind: input, shape index: {}]   ;;  %s762_s2 = inlined_call_operand.hbm [shape: f32[32,128], index: 2, kind: input, shape index: {}]   ;;  %s763_s3 = inlined_call_operand.hbm [shape: f32[32,128], index: 3, kind: output, shape index: {}]  }
   0x1   :  { %9 = vsyncpa [#allocation7], 0  ;;  %s29_s14 = sshll.u32 %s761_s1, 4  ;;  %s30_s14 = int_to_ptr.hbm [resolvable:$true] %s29_s14 }
   0x2   :  { %10 = vsyncpa [#allocation5], 0  ;;  %s461_s15 = smov [#allocation6]   ;;  %s15_s19 = sshll.u32 %s760_s0, 4  ;;  %s16_s19 = int_to_ptr.hbm [resolvable:$true] %s15_s19 }
   0x3   :  { %s31_s16 = sshll.u32 %s461_s15, 4  ;;  %s462_s20 = smov [#allocation3]   ;;  %s32_s16 = int_to_ptr.vmem [resolvable:$true] %s31_s16 }
   0x4   :  { %34 = dma.hbm_to_vmem [thread:$0]  %s30_s14, 64, %s32_s16, [#allocation7]  }
   0x5   :  { %s17_s21 = sshll.u32 %s462_s20, 4  ;;  %s463_s22 = smov 128   ;;  %s18_s21 = int_to_ptr.vmem [resolvable:$true] %s17_s21 }
   0x6   :  { %s464_s23 = smov 8   ;;  %s39_s25 = sshll.u32 %s762_s2, 4  ;;  %s40_s25 = int_to_ptr.hbm [resolvable:$true] %s39_s25 }
   0x7   :  { %23 = dma.hbm_to_vmem [thread:$0]  %s16_s19, 256, %s18_s21, [#allocation4], %s463_s22, %s463_s22, %s464_s23  }
   0x8   :  { %s465_s26 = smov [#allocation8]  }
   0x9   :  { %s41_s27 = sshll.u32 %s465_s26, 4  ;;  %s42_s27 = int_to_ptr.vmem [resolvable:$true] %s41_s27 }
   0xa   :  { %47 = dma.hbm_to_vmem [thread:$0]  %s40_s25, 512, %s42_s27, [#allocation7], %s463_s22, %s463_s22, %s464_s23  }
   0xb   :  { %455 = dma.done.wait [#allocation4], 256  }
   0xc   :  { %456 = vsyncadd [#allocation4], 4294967040 }
   0xd   :  { %457 = dma.done.wait [#allocation7], 576  }
   0xe   :  { %458 = vsyncadd [#allocation7], 4294966720  ;;  %v60_v0 = vlaneseq  ;;  %v507_v3 = vld [vmem:[#allocation3] sm:$0xff]  ;;  %v509_v4 = vld [vmem:[#allocation3 + $0x8] sm:$0xf]  ;;  %s466_s0 = smov [#allocation9]  }
   0xf   :  { %v514_v6 = vld [vmem:[#allocation6] ss:$0 sm:$0xff]  ;;  %v519_v8 = vld [vmem:[#allocation6 + $0x1] ss:$0 sm:$0xff]  ;;  %v190_v9 = vperm.slane %v507_v3, 3  ;;  %v199_v10 = vperm.slane %v507_v3, 7 }
  0x10   :  { %v502_v1 = vshrl.u32 %v60_v0, 7  ;;  %v212_v11 = vperm.slane %v509_v4, 3  ;;  %v525_v12 = vperm.slane %v507_v3, 2  ;;  %v528_v13 = vperm.slane %v507_v3, 6  ;;  %v537_v15 = vld [vmem:[#allocation6 + $0x2] ss:$0 sm:$0xff] }
  0x11   :  { %v531_v14 = vperm.slane %v509_v4, 2  ;;  %v590_v40 = vperm.slane %v507_v3, 1  ;;  %v606_v46 = vperm.slane %v507_v3, 5  ;;  %v614_v48 = vperm.slane %v509_v4, 1  ;;  %s286_s2 = sshll.u32 %s466_s0, 4  ;;  %s288_s30 = sshll.u32 %s763_s3, 4  ;;  %s287_s2 = int_to_ptr.vmem [resolvable:$true] %s286_s2  ;;  %s289_s30 = int_to_ptr.hbm [resolvable:$true] %s288_s30 }
  0x12   :  { %v505_v2 = vadd.s32 24, %v502_v1  ;;  %v512_v5 = vadd.s32 16, %v502_v1  ;;  %v517_v7 = vadd.s32 8, %v502_v1  ;;  %vm191_vm9 = vcmp.eq.s32.totalorder %v502_v1, %v190_v9 }
  0x13   :  { %vm200_vm10 = vcmp.eq.s32.totalorder %v502_v1, %v199_v10  ;;  %v195_v24 = vsel %vm191_vm9, %v514_v6, 0.0  ;;  %vm213_vm11 = vcmp.eq.s32.totalorder %v502_v1, %v212_v11  ;;  %v656_v62 = vperm.slane %v507_v3, 0 }
  0x14   :  { %vm194_vm0 = vcmp.eq.s32.totalorder %v505_v2, %v190_v9  ;;  %vm203_vm1 = vcmp.eq.s32.totalorder %v505_v2, %v199_v10  ;;  %vm193_vm2 = vcmp.eq.s32.totalorder %v512_v5, %v190_v9  ;;  %vm202_vm3 = vcmp.eq.s32.totalorder %v512_v5, %v199_v10 }
  0x15   :  { %v198_v16 = vsel %vm194_vm0, %v514_v6, 0.0  ;;  %vm216_vm4 = vcmp.eq.s32.totalorder %v505_v2, %v212_v11  ;;  %v197_v17 = vsel %vm193_vm2, %v514_v6, 0.0  ;;  %vm215_vm5 = vcmp.eq.s32.totalorder %v512_v5, %v212_v11 }
  0x16   :  { %v207_v18 = vadd.f32 %v519_v8, %v198_v16  ;;  %v206_v19 = vadd.f32 %v519_v8, %v197_v17  ;;  %vm192_vm6 = vcmp.eq.s32.totalorder %v517_v7, %v190_v9  ;;  %vm201_vm7 = vcmp.eq.s32.totalorder %v517_v7, %v199_v10 }
  0x17   :  { %v196_v20 = vsel %vm192_vm6, %v514_v6, 0.0  ;;  %vm214_vm8 = vcmp.eq.s32.totalorder %v517_v7, %v212_v11  ;;  %v204_v27 = vadd.f32 %v519_v8, %v195_v24  ;;  %vm155_vm12 = vcmp.eq.s32.totalorder %v505_v2, %v525_v12 }
  0x18   :  { %v211_v21 = vsel %vm203_vm1, %v207_v18, %v198_v16  ;;  %v210_v22 = vsel %vm202_vm3, %v206_v19, %v197_v17  ;;  %v205_v23 = vadd.f32 %v519_v8, %v196_v20  ;;  %vm164_vm13 = vcmp.eq.s32.totalorder %v505_v2, %v528_v13 }
  0x19   :  { %v220_v25 = vadd.f32 %v537_v15, %v211_v21  ;;  %v219_v26 = vadd.f32 %v537_v15, %v210_v22  ;;  %vm177_vm14 = vcmp.eq.s32.totalorder %v505_v2, %v531_v14  ;;  %v208_v32 = vsel %vm200_vm10, %v204_v27, %v195_v24 }
  0x1a   :  { %v209_v28 = vsel %vm201_vm7, %v205_v23, %v196_v20  ;;  %v217_v33 = vadd.f32 %v537_v15, %v208_v32  ;;  %v159_v34 = vsel %vm155_vm12, %v514_v6, 0.0  ;;  %vm154_vm15 = vcmp.eq.s32.totalorder %v512_v5, %v525_v12 }
  0x1b   :  { %v224_v29 = vsel %vm216_vm4, %v220_v25, %v211_v21  ;;  %v223_v30 = vsel %vm215_vm5, %v219_v26, %v210_v22  ;;  %v218_v31 = vadd.f32 %v537_v15, %v209_v28  ;;  %vm163_vm0 = vcmp.eq.s32.totalorder %v512_v5, %v528_v13 }
  0x1c   :  { %303 = vmatpush.msra.mxu2 %v224_v29  ;;  %304 = vmatpush.msra.mxu3 %v224_v29  ;;  %v168_v36 = vadd.f32 %v519_v8, %v159_v34  ;;  %v158_v37 = vsel %vm154_vm15, %v514_v6, 0.0  ;;  %vm176_vm1 = vcmp.eq.s32.totalorder %v512_v5, %v531_v14  ;;  %v221_v38 = vsel %vm213_vm11, %v217_v33, %v208_v32 }
  0x1d   :  { %v222_v35 = vsel %vm214_vm8, %v218_v31, %v209_v28  ;;  %249 = vmatpush.msra.mxu0 %v224_v29  ;;  %302 = vmatpush.msra.mxu1 %v224_v29  ;;  %v167_v39 = vadd.f32 %v519_v8, %v158_v37  ;;  %vm153_vm2 = vcmp.eq.s32.totalorder %v517_v7, %v525_v12  ;;  %v681_v16 = vperm.slane %v509_v4, 0 }
  0x1e   :  { %306 = vmatpush.msra.mxu2 %v223_v30  ;;  %307 = vmatpush.msra.mxu3 %v223_v30  ;;  %v172_v41 = vsel %vm164_vm13, %v168_v36, %v159_v34  ;;  %v157_v42 = vsel %vm153_vm2, %v514_v6, 0.0  ;;  %vm162_vm3 = vcmp.eq.s32.totalorder %v517_v7, %v528_v13  ;;  %vm175_vm4 = vcmp.eq.s32.totalorder %v517_v7, %v531_v14 }
  0x1f   :  { %250 = vmatpush.msra.mxu0 %v223_v30  ;;  %305 = vmatpush.msra.mxu1 %v223_v30  ;;  %v181_v43 = vadd.f32 %v537_v15, %v172_v41  ;;  %v171_v44 = vsel %vm163_vm0, %v167_v39, %v158_v37  ;;  %v166_v45 = vadd.f32 %v519_v8, %v157_v42 }
  0x20   :  { %309 = vmatpush.msra.mxu2 %v222_v35  ;;  %310 = vmatpush.msra.mxu3 %v222_v35  ;;  %v180_v47 = vadd.f32 %v537_v15, %v171_v44  ;;  %vm152_vm5 = vcmp.eq.s32.totalorder %v502_v1, %v525_v12  ;;  %vm161_vm6 = vcmp.eq.s32.totalorder %v502_v1, %v528_v13  ;;  %v673_v13 = vperm.slane %v507_v3, 4 }
  0x21   :  { %251 = vmatpush.msra.mxu0 %v222_v35  ;;  %308 = vmatpush.msra.mxu1 %v222_v35  ;;  %v185_v49 = vsel %vm177_vm14, %v181_v43, %v172_v41  ;;  %v170_v50 = vsel %vm162_vm3, %v166_v45, %v157_v42  ;;  %v156_v51 = vsel %vm152_vm5, %v514_v6, 0.0  ;;  %vm174_vm7 = vcmp.eq.s32.totalorder %v502_v1, %v531_v14  ;;  %v229_v43 = vld [vmem:[#allocation8] sm:$0xff] }
  0x22   :  { %312 = vmatpush.msra.mxu2 %v221_v38  ;;  %313 = vmatpush.msra.mxu3 %v221_v38  ;;  %v184_v52 = vsel %vm176_vm1, %v180_v47, %v171_v44  ;;  %v179_v53 = vadd.f32 %v537_v15, %v170_v50  ;;  %v165_v54 = vadd.f32 %v519_v8, %v156_v51 }
  0x23   :  { %252 = vmatpush.msra.mxu0 %v221_v38  ;;  %311 = vmatpush.msra.mxu1 %v221_v38  ;;  %vm116_vm8 = vcmp.eq.s32.totalorder %v505_v2, %v590_v40  ;;  %vm125_vm9 = vcmp.eq.s32.totalorder %v505_v2, %v606_v46  ;;  %vm138_vm10 = vcmp.eq.s32.totalorder %v505_v2, %v614_v48 }
  0x24   :  { %315 = vmatpush.msra.mxu2 %v185_v49  ;;  %316 = vmatpush.msra.mxu3 %v185_v49  ;;  %v183_v55 = vsel %vm175_vm4, %v179_v53, %v170_v50  ;;  %v169_v56 = vsel %vm161_vm6, %v165_v54, %v156_v51  ;;  %v120_v57 = vsel %vm116_vm8, %v514_v6, 0.0  ;;  %vm115_vm11 = vcmp.eq.s32.totalorder %v512_v5, %v590_v40 }
  0x25   :  { %253 = vmatpush.msra.mxu0 %v185_v49  ;;  %314 = vmatpush.msra.mxu1 %v185_v49  ;;  %v178_v58 = vadd.f32 %v537_v15, %v169_v56  ;;  %v129_v59 = vadd.f32 %v519_v8, %v120_v57  ;;  %v119_v60 = vsel %vm115_vm11, %v514_v6, 0.0  ;;  %vm124_vm12 = vcmp.eq.s32.totalorder %v512_v5, %v606_v46 }
  0x26   :  { %318 = vmatpush.msra.mxu2 %v184_v52  ;;  %319 = vmatpush.msra.mxu3 %v184_v52  ;;  %v128_v61 = vadd.f32 %v519_v8, %v119_v60  ;;  %vm137_vm13 = vcmp.eq.s32.totalorder %v512_v5, %v614_v48  ;;  %vm114_vm14 = vcmp.eq.s32.totalorder %v517_v7, %v590_v40 }
  0x27   :  { %254 = vmatpush.msra.mxu0 %v184_v52  ;;  %317 = vmatpush.msra.mxu1 %v184_v52  ;;  %v182_v63 = vsel %vm174_vm7, %v178_v58, %v169_v56  ;;  %v133_v0 = vsel %vm125_vm9, %v129_v59, %v120_v57  ;;  %v118_v9 = vsel %vm114_vm14, %v514_v6, 0.0  ;;  %vm123_vm15 = vcmp.eq.s32.totalorder %v517_v7, %v606_v46 }
  0x28   :  { %321 = vmatpush.msra.mxu2 %v183_v55  ;;  %322 = vmatpush.msra.mxu3 %v183_v55  ;;  %v142_v10 = vadd.f32 %v537_v15, %v133_v0  ;;  %v132_v11 = vsel %vm124_vm12, %v128_v61, %v119_v60  ;;  %v127_v12 = vadd.f32 %v519_v8, %v118_v9 }
  0x29   :  { %255 = vmatpush.msra.mxu0 %v183_v55  ;;  %320 = vmatpush.msra.mxu1 %v183_v55  ;;  %v141_v14 = vadd.f32 %v537_v15, %v132_v11  ;;  %vm136_vm0 = vcmp.eq.s32.totalorder %v517_v7, %v614_v48  ;;  %vm113_vm1 = vcmp.eq.s32.totalorder %v502_v1, %v590_v40 }
  0x2a   :  { %324 = vmatpush.msra.mxu2 %v182_v63  ;;  %325 = vmatpush.msra.mxu3 %v182_v63  ;;  %v146_v17 = vsel %vm138_vm10, %v142_v10, %v133_v0  ;;  %v131_v3 = vsel %vm123_vm15, %v127_v12, %v118_v9  ;;  %v117_v18 = vsel %vm113_vm1, %v514_v6, 0.0  ;;  %vm122_vm2 = vcmp.eq.s32.totalorder %v502_v1, %v606_v46 }
  0x2b   :  { %256 = vmatpush.msra.mxu0 %v182_v63  ;;  %323 = vmatpush.msra.mxu1 %v182_v63  ;;  %v145_v4 = vsel %vm137_vm13, %v141_v14, %v132_v11  ;;  %v140_v19 = vadd.f32 %v537_v15, %v131_v3  ;;  %v126_v20 = vadd.f32 %v519_v8, %v117_v18 }
  0x2c   :  { %327 = vmatpush.msra.mxu2 %v146_v17  ;;  %328 = vmatpush.msra.mxu3 %v146_v17  ;;  %vm135_vm3 = vcmp.eq.s32.totalorder %v502_v1, %v614_v48  ;;  %vm77_vm4 = vcmp.eq.s32.totalorder %v505_v2, %v656_v62  ;;  %vm86_vm5 = vcmp.eq.s32.totalorder %v505_v2, %v673_v13 }
  0x2d   :  { %257 = vmatpush.msra.mxu0 %v146_v17  ;;  %326 = vmatpush.msra.mxu1 %v146_v17  ;;  %v144_v21 = vsel %vm136_vm0, %v140_v19, %v131_v3  ;;  %v130_v22 = vsel %vm122_vm2, %v126_v20, %v117_v18  ;;  %v81_v23 = vsel %vm77_vm4, %v514_v6, 0.0  ;;  %vm99_vm6 = vcmp.eq.s32.totalorder %v505_v2, %v681_v16 }
  0x2e   :  { %330 = vmatpush.msra.mxu2 %v145_v4  ;;  %331 = vmatpush.msra.mxu3 %v145_v4  ;;  %v139_v24 = vadd.f32 %v537_v15, %v130_v22  ;;  %v90_v25 = vadd.f32 %v519_v8, %v81_v23  ;;  %vm76_vm7 = vcmp.eq.s32.totalorder %v512_v5, %v656_v62 }
  0x2f   :  { %258 = vmatpush.msra.mxu0 %v145_v4  ;;  %329 = vmatpush.msra.mxu1 %v145_v4  ;;  %v80_v26 = vsel %vm76_vm7, %v514_v6, 0.0  ;;  %vm85_vm8 = vcmp.eq.s32.totalorder %v512_v5, %v673_v13  ;;  %vm98_vm9 = vcmp.eq.s32.totalorder %v512_v5, %v681_v16  ;;  %vm75_vm10 = vcmp.eq.s32.totalorder %v517_v7, %v656_v62  ;;  %v231_v5 = vld [vmem:[#allocation8 + $0x10] sm:$0xff] }
  0x30   :  { %333 = vmatpush.msra.mxu2 %v144_v21  ;;  %334 = vmatpush.msra.mxu3 %v144_v21  ;;  %v143_v27 = vsel %vm135_vm3, %v139_v24, %v130_v22  ;;  %v94_v28 = vsel %vm86_vm5, %v90_v25, %v81_v23  ;;  %v89_v29 = vadd.f32 %v519_v8, %v80_v26  ;;  %v79_v30 = vsel %vm75_vm10, %v514_v6, 0.0 }
  0x31   :  { %259 = vmatpush.msra.mxu0 %v144_v21  ;;  %332 = vmatpush.msra.mxu1 %v144_v21  ;;  %v103_v31 = vadd.f32 %v537_v15, %v94_v28  ;;  %vm84_vm11 = vcmp.eq.s32.totalorder %v517_v7, %v673_v13  ;;  %v88_v32 = vadd.f32 %v519_v8, %v79_v30 }
  0x32   :  { %336 = vmatpush.msra.mxu2 %v143_v27  ;;  %337 = vmatpush.msra.mxu3 %v143_v27  ;;  %v93_v33 = vsel %vm85_vm8, %v89_v29, %v80_v26  ;;  %vm97_vm12 = vcmp.eq.s32.totalorder %v517_v7, %v681_v16  ;;  %vm74_vm13 = vcmp.eq.s32.totalorder %v502_v1, %v656_v62  ;;  %v230_v7 = vld [vmem:[#allocation8 + $0x8] sm:$0xff] }
  0x33   :  { %260 = vmatpush.msra.mxu0 %v143_v27  ;;  %335 = vmatpush.msra.mxu1 %v143_v27  ;;  %v107_v34 = vsel %vm99_vm6, %v103_v31, %v94_v28  ;;  %v102_v35 = vadd.f32 %v537_v15, %v93_v33  ;;  %v92_v36 = vsel %vm84_vm11, %v88_v32, %v79_v30  ;;  %v78_v37 = vsel %vm74_vm13, %v514_v6, 0.0 }
  0x34   :  { %339 = vmatpush.msra.mxu2 %v107_v34  ;;  %340 = vmatpush.msra.mxu3 %v107_v34  ;;  %v101_v38 = vadd.f32 %v537_v15, %v92_v36  ;;  %vm83_vm14 = vcmp.eq.s32.totalorder %v502_v1, %v673_v13  ;;  %v87_v39 = vadd.f32 %v519_v8, %v78_v37  ;;  %v232_v8 = vld [vmem:[#allocation8 + $0x18] sm:$0xff] }
  0x35   :  { %v106_v40 = vsel %vm98_vm9, %v102_v35, %v93_v33  ;;  %261 = vmatpush.msra.mxu0 %v107_v34  ;;  %338 = vmatpush.msra.mxu1 %v107_v34  ;;  %vm96_vm15 = vcmp.eq.s32.totalorder %v502_v1, %v681_v16 }
  0x36   :  { %342 = vmatpush.msra.mxu2 %v106_v40  ;;  %343 = vmatpush.msra.mxu3 %v106_v40  ;;  %v105_v2 = vsel %vm97_vm12, %v101_v38, %v92_v36  ;;  %v91_v6 = vsel %vm83_vm14, %v87_v39, %v78_v37 }
  0x37   :  { %v100_v41 = vadd.f32 %v537_v15, %v91_v6  ;;  %262 = vmatpush.msra.mxu0 %v106_v40  ;;  %341 = vmatpush.msra.mxu1 %v106_v40 }
  0x38   :  { %345 = vmatpush.msra.mxu2 %v105_v2  ;;  %346 = vmatpush.msra.mxu3 %v105_v2 }
  0x39   :  { %v104_v42 = vsel %vm96_vm15, %v100_v41, %v91_v6  ;;  %263 = vmatpush.msra.mxu0 %v105_v2  ;;  %344 = vmatpush.msra.mxu1 %v105_v2 }
  0x3a   :  { %348 = vmatpush.msra.mxu2 %v104_v42  ;;  %349 = vmatpush.msra.mxu3 %v104_v42 }
  0x3b   :  { %271 = vmatmul.f32.vlgmr.msra.gmra.mxu2 %v231_v5  ;;  %274 = vmatmul.f32.vlgmr.msra.gmra.mxu3 %v232_v8 }
  0x3c   :  { %264 = vmatpush.msra.mxu0 %v104_v42  ;;  %347 = vmatpush.msra.mxu1 %v104_v42 }
  0x3d   :  { %265 = vmatmul.f32.vlgmr.msra.gmra.mxu0 %v229_v43  ;;  %268 = vmatmul.f32.vlgmr.msra.gmra.mxu1 %v230_v7 }
  0xba   :  { %v266_v1 = vpop.f32.mrf.mxu0  ;;  %v269_v15 = vpop.f32.mrf.mxu1 }
  0xbb   :  { %278 = vst [vmem:[#allocation9] sm:$0xff] %v266_v1 }
  0xbc   :  { %279 = vst [vmem:[#allocation9 + $0x8] sm:$0xff] %v269_v15 }
  0xbe   :  { %v272_v44 = vpop.f32.mrf.mxu2  ;;  %v275_v45 = vpop.f32.mrf.mxu3 }
  0xbf   :  { %280 = vst [vmem:[#allocation9 + $0x10] sm:$0xff] %v272_v44 }
  0xc0   :  { %281 = vst [vmem:[#allocation9 + $0x18] sm:$0xff] %v275_v45 }
  0xc1   :  { %294 = dma.vmem_to_hbm [thread:$0]  %s287_s2, 512, %s289_s30, [#allocation5], %s463_s22, %s463_s22, %s464_s23  }
  0xc2   :  { %459 = dma.done.wait [#allocation5], 512  }
  0xc3   :  { %460 = vsyncadd [#allocation5], 4294966784 }
  0xc4   :  { %299 = vsyncpa [#allocation4], 1 }
  0xc5   :  { %300 = vsyncpa [#allocation7], 1 }
  0xc6   :  { %301 = vsyncpa [#allocation5], 1 }

// kernel: tpu_custom_call.1
= control target key start
LH: loop header
LB: loop body
LE: loop exit
PB: predicated region body
PF: predicated region fallthrough
CT: control target
= control target key end

     0   :  { %8 = vsyncpa [#allocation4], 0  ;;  %s760_s0 = inlined_call_operand.hbm [shape: s32[12,128], index: 0, kind: input, shape index: {}]   ;;  %s761_s1 = inlined_call_operand.hbm [shape: f32[3,128], index: 1, kind: input, shape index: {}]   ;;  %s762_s2 = inlined_call_operand.hbm [shape: f32[32,128], index: 2, kind: input, shape index: {}]   ;;  %s763_s3 = inlined_call_operand.hbm [shape: f32[32,128], index: 3, kind: output, shape index: {}]  }
   0x1   :  { %9 = vsyncpa [#allocation7], 0  ;;  %s29_s14 = sshll.u32 %s761_s1, 4  ;;  %s30_s14 = int_to_ptr.hbm [resolvable:$true] %s29_s14 }
   0x2   :  { %10 = vsyncpa [#allocation5], 0  ;;  %s461_s15 = smov [#allocation6]   ;;  %s15_s19 = sshll.u32 %s760_s0, 4  ;;  %s16_s19 = int_to_ptr.hbm [resolvable:$true] %s15_s19 }
   0x3   :  { %s31_s16 = sshll.u32 %s461_s15, 4  ;;  %s462_s20 = smov [#allocation3]   ;;  %s32_s16 = int_to_ptr.vmem [resolvable:$true] %s31_s16 }
   0x4   :  { %34 = dma.hbm_to_vmem [thread:$0]  %s30_s14, 64, %s32_s16, [#allocation7]  }
   0x5   :  { %s17_s21 = sshll.u32 %s462_s20, 4  ;;  %s463_s22 = smov 128   ;;  %s18_s21 = int_to_ptr.vmem [resolvable:$true] %s17_s21 }
   0x6   :  { %s464_s23 = smov 8   ;;  %s39_s25 = sshll.u32 %s762_s2, 4  ;;  %s40_s25 = int_to_ptr.hbm [resolvable:$true] %s39_s25 }
   0x7   :  { %23 = dma.hbm_to_vmem [thread:$0]  %s16_s19, 256, %s18_s21, [#allocation4], %s463_s22, %s463_s22, %s464_s23  }
   0x8   :  { %s465_s26 = smov [#allocation8]  }
   0x9   :  { %s41_s27 = sshll.u32 %s465_s26, 4  ;;  %s42_s27 = int_to_ptr.vmem [resolvable:$true] %s41_s27 }
   0xa   :  { %47 = dma.hbm_to_vmem [thread:$0]  %s40_s25, 512, %s42_s27, [#allocation7], %s463_s22, %s463_s22, %s464_s23  }
   0xb   :  { %455 = dma.done.wait [#allocation4], 256  }
   0xc   :  { %456 = vsyncadd [#allocation4], 4294967040 }
   0xd   :  { %457 = dma.done.wait [#allocation7], 576  }
   0xe   :  { %458 = vsyncadd [#allocation7], 4294966720  ;;  %v60_v0 = vlaneseq  ;;  %v507_v3 = vld [vmem:[#allocation3] sm:$0xff]  ;;  %v509_v4 = vld [vmem:[#allocation3 + $0x8] sm:$0xf]  ;;  %s466_s0 = smov [#allocation9]  }
   0xf   :  { %v514_v6 = vld [vmem:[#allocation6] ss:$0 sm:$0xff]  ;;  %v519_v8 = vld [vmem:[#allocation6 + $0x1] ss:$0 sm:$0xff]  ;;  %v190_v9 = vperm.slane %v507_v3, 3  ;;  %v199_v10 = vperm.slane %v507_v3, 7 }
  0x10   :  { %v502_v1 = vshrl.u32 %v60_v0, 7  ;;  %v212_v11 = vperm.slane %v509_v4, 3  ;;  %v525_v12 = vperm.slane %v507_v3, 2  ;;  %v528_v13 = vperm.slane %v507_v3, 6  ;;  %v537_v15 = vld [vmem:[#allocation6 + $0x2] ss:$0 sm:$0xff] }
  0x11   :  { %v531_v14 = vperm.slane %v509_v4, 2  ;;  %v590_v40 = vperm.slane %v507_v3, 1  ;;  %v606_v46 = vperm.slane %v507_v3, 5  ;;  %v614_v48 = vperm.slane %v509_v4, 1  ;;  %s286_s2 = sshll.u32 %s466_s0, 4  ;;  %s288_s30 = sshll.u32 %s763_s3, 4  ;;  %s287_s2 = int_to_ptr.vmem [resolvable:$true] %s286_s2  ;;  %s289_s30 = int_to_ptr.hbm [resolvable:$true] %s288_s30 }
  0x12   :  { %v505_v2 = vadd.s32 24, %v502_v1  ;;  %v512_v5 = vadd.s32 16, %v502_v1  ;;  %v517_v7 = vadd.s32 8, %v502_v1  ;;  %vm191_vm9 = vcmp.eq.s32.totalorder %v502_v1, %v190_v9 }
  0x13   :  { %vm200_vm10 = vcmp.eq.s32.totalorder %v502_v1, %v199_v10  ;;  %v195_v24 = vsel %vm191_vm9, %v514_v6, 0.0  ;;  %vm213_vm11 = vcmp.eq.s32.totalorder %v502_v1, %v212_v11  ;;  %v656_v62 = vperm.slane %v507_v3, 0 }
  0x14   :  { %vm194_vm0 = vcmp.eq.s32.totalorder %v505_v2, %v190_v9  ;;  %vm203_vm1 = vcmp.eq.s32.totalorder %v505_v2, %v199_v10  ;;  %vm193_vm2 = vcmp.eq.s32.totalorder %v512_v5, %v190_v9  ;;  %vm202_vm3 = vcmp.eq.s32.totalorder %v512_v5, %v199_v10 }
  0x15   :  { %v198_v16 = vsel %vm194_vm0, %v514_v6, 0.0  ;;  %vm216_vm4 = vcmp.eq.s32.totalorder %v505_v2, %v212_v11  ;;  %v197_v17 = vsel %vm193_vm2, %v514_v6, 0.0  ;;  %vm215_vm5 = vcmp.eq.s32.totalorder %v512_v5, %v212_v11 }
  0x16   :  { %v207_v18 = vadd.f32 %v519_v8, %v198_v16  ;;  %v206_v19 = vadd.f32 %v519_v8, %v197_v17  ;;  %vm192_vm6 = vcmp.eq.s32.totalorder %v517_v7, %v190_v9  ;;  %vm201_vm7 = vcmp.eq.s32.totalorder %v517_v7, %v199_v10 }
  0x17   :  { %v196_v20 = vsel %vm192_vm6, %v514_v6, 0.0  ;;  %vm214_vm8 = vcmp.eq.s32.totalorder %v517_v7, %v212_v11  ;;  %v204_v27 = vadd.f32 %v519_v8, %v195_v24  ;;  %vm155_vm12 = vcmp.eq.s32.totalorder %v505_v2, %v525_v12 }
  0x18   :  { %v211_v21 = vsel %vm203_vm1, %v207_v18, %v198_v16  ;;  %v210_v22 = vsel %vm202_vm3, %v206_v19, %v197_v17  ;;  %v205_v23 = vadd.f32 %v519_v8, %v196_v20  ;;  %vm164_vm13 = vcmp.eq.s32.totalorder %v505_v2, %v528_v13 }
  0x19   :  { %v220_v25 = vadd.f32 %v537_v15, %v211_v21  ;;  %v219_v26 = vadd.f32 %v537_v15, %v210_v22  ;;  %vm177_vm14 = vcmp.eq.s32.totalorder %v505_v2, %v531_v14  ;;  %v208_v32 = vsel %vm200_vm10, %v204_v27, %v195_v24 }
  0x1a   :  { %v209_v28 = vsel %vm201_vm7, %v205_v23, %v196_v20  ;;  %v217_v33 = vadd.f32 %v537_v15, %v208_v32  ;;  %v159_v34 = vsel %vm155_vm12, %v514_v6, 0.0  ;;  %vm154_vm15 = vcmp.eq.s32.totalorder %v512_v5, %v525_v12 }
  0x1b   :  { %v224_v29 = vsel %vm216_vm4, %v220_v25, %v211_v21  ;;  %v223_v30 = vsel %vm215_vm5, %v219_v26, %v210_v22  ;;  %v218_v31 = vadd.f32 %v537_v15, %v209_v28  ;;  %vm163_vm0 = vcmp.eq.s32.totalorder %v512_v5, %v528_v13 }
  0x1c   :  { %303 = vmatpush.msra.mxu2 %v224_v29  ;;  %304 = vmatpush.msra.mxu3 %v224_v29  ;;  %v168_v36 = vadd.f32 %v519_v8, %v159_v34  ;;  %v158_v37 = vsel %vm154_vm15, %v514_v6, 0.0  ;;  %vm176_vm1 = vcmp.eq.s32.totalorder %v512_v5, %v531_v14  ;;  %v221_v38 = vsel %vm213_vm11, %v217_v33, %v208_v32 }
  0x1d   :  { %v222_v35 = vsel %vm214_vm8, %v218_v31, %v209_v28  ;;  %249 = vmatpush.msra.mxu0 %v224_v29  ;;  %302 = vmatpush.msra.mxu1 %v224_v29  ;;  %v167_v39 = vadd.f32 %v519_v8, %v158_v37  ;;  %vm153_vm2 = vcmp.eq.s32.totalorder %v517_v7, %v525_v12  ;;  %v681_v16 = vperm.slane %v509_v4, 0 }
  0x1e   :  { %306 = vmatpush.msra.mxu2 %v223_v30  ;;  %307 = vmatpush.msra.mxu3 %v223_v30  ;;  %v172_v41 = vsel %vm164_vm13, %v168_v36, %v159_v34  ;;  %v157_v42 = vsel %vm153_vm2, %v514_v6, 0.0  ;;  %vm162_vm3 = vcmp.eq.s32.totalorder %v517_v7, %v528_v13  ;;  %vm175_vm4 = vcmp.eq.s32.totalorder %v517_v7, %v531_v14 }
  0x1f   :  { %250 = vmatpush.msra.mxu0 %v223_v30  ;;  %305 = vmatpush.msra.mxu1 %v223_v30  ;;  %v181_v43 = vadd.f32 %v537_v15, %v172_v41  ;;  %v171_v44 = vsel %vm163_vm0, %v167_v39, %v158_v37  ;;  %v166_v45 = vadd.f32 %v519_v8, %v157_v42 }
  0x20   :  { %309 = vmatpush.msra.mxu2 %v222_v35  ;;  %310 = vmatpush.msra.mxu3 %v222_v35  ;;  %v180_v47 = vadd.f32 %v537_v15, %v171_v44  ;;  %vm152_vm5 = vcmp.eq.s32.totalorder %v502_v1, %v525_v12  ;;  %vm161_vm6 = vcmp.eq.s32.totalorder %v502_v1, %v528_v13  ;;  %v673_v13 = vperm.slane %v507_v3, 4 }
  0x21   :  { %251 = vmatpush.msra.mxu0 %v222_v35  ;;  %308 = vmatpush.msra.mxu1 %v222_v35  ;;  %v185_v49 = vsel %vm177_vm14, %v181_v43, %v172_v41  ;;  %v170_v50 = vsel %vm162_vm3, %v166_v45, %v157_v42  ;;  %v156_v51 = vsel %vm152_vm5, %v514_v6, 0.0  ;;  %vm174_vm7 = vcmp.eq.s32.totalorder %v502_v1, %v531_v14  ;;  %v229_v43 = vld [vmem:[#allocation8] sm:$0xff] }
  0x22   :  { %312 = vmatpush.msra.mxu2 %v221_v38  ;;  %313 = vmatpush.msra.mxu3 %v221_v38  ;;  %v184_v52 = vsel %vm176_vm1, %v180_v47, %v171_v44  ;;  %v179_v53 = vadd.f32 %v537_v15, %v170_v50  ;;  %v165_v54 = vadd.f32 %v519_v8, %v156_v51 }
  0x23   :  { %252 = vmatpush.msra.mxu0 %v221_v38  ;;  %311 = vmatpush.msra.mxu1 %v221_v38  ;;  %vm116_vm8 = vcmp.eq.s32.totalorder %v505_v2, %v590_v40  ;;  %vm125_vm9 = vcmp.eq.s32.totalorder %v505_v2, %v606_v46  ;;  %vm138_vm10 = vcmp.eq.s32.totalorder %v505_v2, %v614_v48 }
  0x24   :  { %315 = vmatpush.msra.mxu2 %v185_v49  ;;  %316 = vmatpush.msra.mxu3 %v185_v49  ;;  %v183_v55 = vsel %vm175_vm4, %v179_v53, %v170_v50  ;;  %v169_v56 = vsel %vm161_vm6, %v165_v54, %v156_v51  ;;  %v120_v57 = vsel %vm116_vm8, %v514_v6, 0.0  ;;  %vm115_vm11 = vcmp.eq.s32.totalorder %v512_v5, %v590_v40 }
  0x25   :  { %253 = vmatpush.msra.mxu0 %v185_v49  ;;  %314 = vmatpush.msra.mxu1 %v185_v49  ;;  %v178_v58 = vadd.f32 %v537_v15, %v169_v56  ;;  %v129_v59 = vadd.f32 %v519_v8, %v120_v57  ;;  %v119_v60 = vsel %vm115_vm11, %v514_v6, 0.0  ;;  %vm124_vm12 = vcmp.eq.s32.totalorder %v512_v5, %v606_v46 }
  0x26   :  { %318 = vmatpush.msra.mxu2 %v184_v52  ;;  %319 = vmatpush.msra.mxu3 %v184_v52  ;;  %v128_v61 = vadd.f32 %v519_v8, %v119_v60  ;;  %vm137_vm13 = vcmp.eq.s32.totalorder %v512_v5, %v614_v48  ;;  %vm114_vm14 = vcmp.eq.s32.totalorder %v517_v7, %v590_v40 }
  0x27   :  { %254 = vmatpush.msra.mxu0 %v184_v52  ;;  %317 = vmatpush.msra.mxu1 %v184_v52  ;;  %v182_v63 = vsel %vm174_vm7, %v178_v58, %v169_v56  ;;  %v133_v0 = vsel %vm125_vm9, %v129_v59, %v120_v57  ;;  %v118_v9 = vsel %vm114_vm14, %v514_v6, 0.0  ;;  %vm123_vm15 = vcmp.eq.s32.totalorder %v517_v7, %v606_v46 }
  0x28   :  { %321 = vmatpush.msra.mxu2 %v183_v55  ;;  %322 = vmatpush.msra.mxu3 %v183_v55  ;;  %v142_v10 = vadd.f32 %v537_v15, %v133_v0  ;;  %v132_v11 = vsel %vm124_vm12, %v128_v61, %v119_v60  ;;  %v127_v12 = vadd.f32 %v519_v8, %v118_v9 }
  0x29   :  { %255 = vmatpush.msra.mxu0 %v183_v55  ;;  %320 = vmatpush.msra.mxu1 %v183_v55  ;;  %v141_v14 = vadd.f32 %v537_v15, %v132_v11  ;;  %vm136_vm0 = vcmp.eq.s32.totalorder %v517_v7, %v614_v48  ;;  %vm113_vm1 = vcmp.eq.s32.totalorder %v502_v1, %v590_v40 }
  0x2a   :  { %324 = vmatpush.msra.mxu2 %v182_v63  ;;  %325 = vmatpush.msra.mxu3 %v182_v63  ;;  %v146_v17 = vsel %vm138_vm10, %v142_v10, %v133_v0  ;;  %v131_v3 = vsel %vm123_vm15, %v127_v12, %v118_v9  ;;  %v117_v18 = vsel %vm113_vm1, %v514_v6, 0.0  ;;  %vm122_vm2 = vcmp.eq.s32.totalorder %v502_v1, %v606_v46 }
  0x2b   :  { %256 = vmatpush.msra.mxu0 %v182_v63  ;;  %323 = vmatpush.msra.mxu1 %v182_v63  ;;  %v145_v4 = vsel %vm137_vm13, %v141_v14, %v132_v11  ;;  %v140_v19 = vadd.f32 %v537_v15, %v131_v3  ;;  %v126_v20 = vadd.f32 %v519_v8, %v117_v18 }
  0x2c   :  { %327 = vmatpush.msra.mxu2 %v146_v17  ;;  %328 = vmatpush.msra.mxu3 %v146_v17  ;;  %vm135_vm3 = vcmp.eq.s32.totalorder %v502_v1, %v614_v48  ;;  %vm77_vm4 = vcmp.eq.s32.totalorder %v505_v2, %v656_v62  ;;  %vm86_vm5 = vcmp.eq.s32.totalorder %v505_v2, %v673_v13 }
  0x2d   :  { %257 = vmatpush.msra.mxu0 %v146_v17  ;;  %326 = vmatpush.msra.mxu1 %v146_v17  ;;  %v144_v21 = vsel %vm136_vm0, %v140_v19, %v131_v3  ;;  %v130_v22 = vsel %vm122_vm2, %v126_v20, %v117_v18  ;;  %v81_v23 = vsel %vm77_vm4, %v514_v6, 0.0  ;;  %vm99_vm6 = vcmp.eq.s32.totalorder %v505_v2, %v681_v16 }
  0x2e   :  { %330 = vmatpush.msra.mxu2 %v145_v4  ;;  %331 = vmatpush.msra.mxu3 %v145_v4  ;;  %v139_v24 = vadd.f32 %v537_v15, %v130_v22  ;;  %v90_v25 = vadd.f32 %v519_v8, %v81_v23  ;;  %vm76_vm7 = vcmp.eq.s32.totalorder %v512_v5, %v656_v62 }
  0x2f   :  { %258 = vmatpush.msra.mxu0 %v145_v4  ;;  %329 = vmatpush.msra.mxu1 %v145_v4  ;;  %v80_v26 = vsel %vm76_vm7, %v514_v6, 0.0  ;;  %vm85_vm8 = vcmp.eq.s32.totalorder %v512_v5, %v673_v13  ;;  %vm98_vm9 = vcmp.eq.s32.totalorder %v512_v5, %v681_v16  ;;  %vm75_vm10 = vcmp.eq.s32.totalorder %v517_v7, %v656_v62  ;;  %v231_v5 = vld [vmem:[#allocation8 + $0x10] sm:$0xff] }
  0x30   :  { %333 = vmatpush.msra.mxu2 %v144_v21  ;;  %334 = vmatpush.msra.mxu3 %v144_v21  ;;  %v143_v27 = vsel %vm135_vm3, %v139_v24, %v130_v22  ;;  %v94_v28 = vsel %vm86_vm5, %v90_v25, %v81_v23  ;;  %v89_v29 = vadd.f32 %v519_v8, %v80_v26  ;;  %v79_v30 = vsel %vm75_vm10, %v514_v6, 0.0 }
  0x31   :  { %259 = vmatpush.msra.mxu0 %v144_v21  ;;  %332 = vmatpush.msra.mxu1 %v144_v21  ;;  %v103_v31 = vadd.f32 %v537_v15, %v94_v28  ;;  %vm84_vm11 = vcmp.eq.s32.totalorder %v517_v7, %v673_v13  ;;  %v88_v32 = vadd.f32 %v519_v8, %v79_v30 }
  0x32   :  { %336 = vmatpush.msra.mxu2 %v143_v27  ;;  %337 = vmatpush.msra.mxu3 %v143_v27  ;;  %v93_v33 = vsel %vm85_vm8, %v89_v29, %v80_v26  ;;  %vm97_vm12 = vcmp.eq.s32.totalorder %v517_v7, %v681_v16  ;;  %vm74_vm13 = vcmp.eq.s32.totalorder %v502_v1, %v656_v62  ;;  %v230_v7 = vld [vmem:[#allocation8 + $0x8] sm:$0xff] }
  0x33   :  { %260 = vmatpush.msra.mxu0 %v143_v27  ;;  %335 = vmatpush.msra.mxu1 %v143_v27  ;;  %v107_v34 = vsel %vm99_vm6, %v103_v31, %v94_v28  ;;  %v102_v35 = vadd.f32 %v537_v15, %v93_v33  ;;  %v92_v36 = vsel %vm84_vm11, %v88_v32, %v79_v30  ;;  %v78_v37 = vsel %vm74_vm13, %v514_v6, 0.0 }
  0x34   :  { %339 = vmatpush.msra.mxu2 %v107_v34  ;;  %340 = vmatpush.msra.mxu3 %v107_v34  ;;  %v101_v38 = vadd.f32 %v537_v15, %v92_v36  ;;  %vm83_vm14 = vcmp.eq.s32.totalorder %v502_v1, %v673_v13  ;;  %v87_v39 = vadd.f32 %v519_v8, %v78_v37  ;;  %v232_v8 = vld [vmem:[#allocation8 + $0x18] sm:$0xff] }
  0x35   :  { %v106_v40 = vsel %vm98_vm9, %v102_v35, %v93_v33  ;;  %261 = vmatpush.msra.mxu0 %v107_v34  ;;  %338 = vmatpush.msra.mxu1 %v107_v34  ;;  %vm96_vm15 = vcmp.eq.s32.totalorder %v502_v1, %v681_v16 }
  0x36   :  { %342 = vmatpush.msra.mxu2 %v106_v40  ;;  %343 = vmatpush.msra.mxu3 %v106_v40  ;;  %v105_v2 = vsel %vm97_vm12, %v101_v38, %v92_v36  ;;  %v91_v6 = vsel %vm83_vm14, %v87_v39, %v78_v37 }
  0x37   :  { %v100_v41 = vadd.f32 %v537_v15, %v91_v6  ;;  %262 = vmatpush.msra.mxu0 %v106_v40  ;;  %341 = vmatpush.msra.mxu1 %v106_v40 }
  0x38   :  { %345 = vmatpush.msra.mxu2 %v105_v2  ;;  %346 = vmatpush.msra.mxu3 %v105_v2 }
  0x39   :  { %v104_v42 = vsel %vm96_vm15, %v100_v41, %v91_v6  ;;  %263 = vmatpush.msra.mxu0 %v105_v2  ;;  %344 = vmatpush.msra.mxu1 %v105_v2 }
  0x3a   :  { %348 = vmatpush.msra.mxu2 %v104_v42  ;;  %349 = vmatpush.msra.mxu3 %v104_v42 }
  0x3b   :  { %271 = vmatmul.f32.vlgmr.msra.gmra.mxu2 %v231_v5  ;;  %274 = vmatmul.f32.vlgmr.msra.gmra.mxu3 %v232_v8 }
  0x3c   :  { %264 = vmatpush.msra.mxu0 %v104_v42  ;;  %347 = vmatpush.msra.mxu1 %v104_v42 }
  0x3d   :  { %265 = vmatmul.f32.vlgmr.msra.gmra.mxu0 %v229_v43  ;;  %268 = vmatmul.f32.vlgmr.msra.gmra.mxu1 %v230_v7 }
  0xba   :  { %v266_v1 = vpop.f32.mrf.mxu0  ;;  %v269_v15 = vpop.f32.mrf.mxu1 }
  0xbb   :  { %278 = vst [vmem:[#allocation9] sm:$0xff] %v266_v1 }
  0xbc   :  { %279 = vst [vmem:[#allocation9 + $0x8] sm:$0xff] %v269_v15 }
  0xbe   :  { %v272_v44 = vpop.f32.mrf.mxu2  ;;  %v275_v45 = vpop.f32.mrf.mxu3 }
  0xbf   :  { %280 = vst [vmem:[#allocation9 + $0x10] sm:$0xff] %v272_v44 }
  0xc0   :  { %281 = vst [vmem:[#allocation9 + $0x18] sm:$0xff] %v275_v45 }
  0xc1   :  { %294 = dma.vmem_to_hbm [thread:$0]  %s287_s2, 512, %s289_s30, [#allocation5], %s463_s22, %s463_s22, %s464_s23  }
  0xc2   :  { %459 = dma.done.wait [#allocation5], 512  }
  0xc3   :  { %460 = vsyncadd [#allocation5], 4294966784 }
  0xc4   :  { %299 = vsyncpa [#allocation4], 1 }
  0xc5   :  { %300 = vsyncpa [#allocation7], 1 }
  0xc6   :  { %301 = vsyncpa [#allocation5], 1 }

</bundles_post_ra>
